<compile_context>
chip_gen: v7x
topology: tpu7x:2x2x1
jax: 0.10.0
libtpu: 0.0.40
codegen_flags: <defaults>
</compile_context>

<pallas_src>
import functools

import jax
import jax.numpy as jnp
import numpy as np
from jax import lax
from jax.experimental import pallas as pl
from jax.experimental.pallas import tpu as pltpu


# Row offsets (8-sublane aligned) of each fused weight block inside the packed slab.
#   HEAD: rows 0-3 branch1 1x1, 4-7 branch2 1x1, 8-11 branch0 1x1   (12, C)
#   MID : rows 0-7 branch2 3x3 (4->6, cout padded to 8, cin offset 4),
#         rows 8-11 branch1 3x3 (4->4, cin offset 0)                 (12, 72)
#   W3  : branch2 final 3x3 (6->8, cin padded to 8)                  (8, 72)
#   PROJ: final 1x1 conv (16 -> C, bias=True)                        (C, 16)
_R_HEAD, _R_MID, _R_W3, _R_PROJ = 0, 16, 32, 40


def _kernel(x_ref, wb_ref, mask_ref, o_ref, *, W, scale, activation):
    """x_ref: (B, C, H*W) f32, wb_ref: packed weights+bias, mask_ref: (8, B*H*W) f32."""
    B, C, N = x_ref.shape
    BN = B * N
    bias_col = wb_ref.shape[1] - 1

    # Gather the batch along the lane axis -> (C, B*H*W); offsets are 128-aligned.
    if B == 1:
        xin = x_ref[0]
    else:
        xin = jnp.concatenate([x_ref[b] for b in range(B)], axis=1)

    masks = mask_ref[...]                                    # (8, BN), rows are {0, 1}

    def shifted_stack(t):
        # 3x3 SAME-pad conv input: 9 lane-rolled, edge-masked copies stacked on sublanes.
        # Rolls that cross image / batch / array boundaries are always edge-masked to 0.
        parts = []
        mi = 0
        for ky in range(3):
            for kx in range(3):
                dy, dx = ky - 1, kx - 1
                s = dy * W + dx                              # flat shift within an image
                v = t if s == 0 else pltpu.roll(t, (-s) % BN, axis=1)
                if (dy, dx) != (0, 0):
                    v = v * masks[mi:mi + 1, :]              # zero out-of-image taps
                    mi += 1
                parts.append(v)
        return jnp.concatenate(parts, axis=0)                # (9 * Cin, BN)

    def dense(row, nrows, k, inp, relu=True):
        w = wb_ref[pl.ds(row, nrows), pl.ds(0, k)]
        b = wb_ref[pl.ds(row, nrows), pl.ds(bias_col, 1)]
        y = jnp.dot(w, inp, preferred_element_type=jnp.float32) + b
        return jnp.maximum(y, 0.0) if relu else y

    # 1) three branch-head 1x1 conv-BN-ReLUs fused into a single matmul.
    head = dense(_R_HEAD, 12, C, xin)                        # (12, BN)
    # 2) branch-1 3x3 + branch-2 first 3x3 fused over one 8-channel shifted stack.
    mid = dense(_R_MID, 12, 72, shifted_stack(head[0:8]))    # rows 0-7: t2 (padded), 8-11: x1
    # 3) branch-2 final 3x3 on the padded 8-channel intermediate.
    x2 = dense(_R_W3, 8, 72, shifted_stack(mid[0:8]))        # (8, BN)
    # 4) torch.cat((x0, x1, x2), dim=1) followed by conv(16 -> C, bias=True).
    xres = dense(_R_PROJ, C, 16,
                 jnp.concatenate([head[8:12], mid[8:12], x2], axis=0), relu=False)

    out = xin + scale * xres
    if activation:
        out = jnp.maximum(out, 0.0)
    for b in range(B):
        o_ref[b] = out[:, b * N:(b + 1) * N]                 # lane-dense (C, 256) stores


def _flatten_3x3(w_hwio, *, cin_total=None, cin_offset=0, cout_total=None):
    """(3, 3, Cin, Cout) HWIO -> (Cout', 9*Cin'); column index = tap*Cin' + ci with
    tap = ky*3 + kx (same order as the kernel's shifted stack).  The real input
    channels are placed at [cin_offset, cin_offset+Cin) inside the padded Cin'."""
    kh, kw, cin, cout = w_hwio.shape
    cin_total = cin if cin_total is None else cin_total
    w = jnp.zeros((kh, kw, cin_total, cout), w_hwio.dtype)
    w = w.at[:, :, cin_offset:cin_offset + cin, :].set(w_hwio)
    if cout_total is not None and cout_total > cout:
        w = jnp.pad(w, ((0, 0), (0, 0), (0, 0), (0, cout_total - cout)))
    cout = w.shape[3]
    return w.reshape(9, cin_total, cout).transpose(2, 0, 1).reshape(cout, 9 * cin_total)


def _pack_params(p, C):
    """Pack all folded weights + biases into one f32 slab (last column = bias)."""
    rows = _R_PROJ + max(8, -(-C // 8) * 8)
    cols = max(72, 16, C) + 1
    bias_col = cols - 1
    slab = jnp.zeros((rows, cols), jnp.float32)

    def put(slab, row, w, b):
        n, k = w.shape
        slab = slab.at[row:row + n, 0:k].set(w.astype(jnp.float32))
        return slab.at[row:row + n, bias_col].set(b.reshape(n).astype(jnp.float32))

    # Fused 1x1 heads (order: branch1, branch2, branch0 so the 3x3 inputs are rows 0-7).
    w_head = jnp.concatenate([p["b1_w1"].T, p["b2_w1"].T, p["b0_w"].T], axis=0)   # (12, C)
    b_head = jnp.concatenate([p["b1_b1"].reshape(-1), p["b2_b1"].reshape(-1),
                              p["b0_b"].reshape(-1)])
    slab = put(slab, _R_HEAD, w_head, b_head)

    # Fused mid matmul: block-diagonal over the 8-channel stacked input
    # (ci 0-3 = branch1 head output, ci 4-7 = branch2 head output).
    w_mid = jnp.concatenate(
        [_flatten_3x3(p["b2_w2"], cin_total=8, cin_offset=4, cout_total=8),
         _flatten_3x3(p["b1_w2"], cin_total=8, cin_offset=0)], axis=0)            # (12, 72)
    b_mid = jnp.concatenate([jnp.pad(p["b2_b2"].reshape(-1), (0, 2)),
                             p["b1_b2"].reshape(-1)])
    slab = put(slab, _R_MID, w_mid, b_mid)

    slab = put(slab, _R_W3, _flatten_3x3(p["b2_w3"], cin_total=8),
               p["b2_b3"].reshape(-1))
    slab = put(slab, _R_PROJ, p["cw"].T, p["cb"].reshape(-1))
    return slab


def _edge_masks(B, H, W):
    """(8, B*H*W) {0,1} masks, one row per non-center 3x3 tap, tap order = (ky, kx)."""
    r = np.arange(B * H * W) % (H * W)
    yy, xx = r // W, r % W
    rows = []
    for ky in range(3):
        for kx in range(3):
            dy, dx = ky - 1, kx - 1
            if (dy, dx) == (0, 0):
                continue
            rows.append((yy + dy >= 0) & (yy + dy < H) & (xx + dx >= 0) & (xx + dx < W))
    return jnp.asarray(np.stack(rows).astype(np.float32))


def inception_resnet_a_eighth(x_nchw, params, *, scale=1.0, activation=True):
    B, C, H, W = x_nchw.shape
    N = H * W
    # NCHW is already channel-major: a pure reshape gives the lane-dense layout.
    x3 = x_nchw.reshape(B, C, N).astype(jnp.float32)
    slab = _pack_params(params, C)
    masks = _edge_masks(B, H, W)
    out = pl.pallas_call(
        functools.partial(_kernel, W=W, scale=scale, activation=activation),
        out_shape=jax.ShapeDtypeStruct((B, C, N), jnp.float32),
    )(x3, slab, masks)
    return out.reshape(B, C, H, W)


def make_params(key, in_channels):
    """Deterministic synthetic params.  Conv+BN branches are pre-folded:
    w' = w * gamma/sqrt(var+eps), b' = beta - mean*gamma/sqrt(var+eps)."""
    eps = 1e-3
    keys = iter(jax.random.split(key, 64))

    def conv_bn(cin, cout, k):
        shape = (cin, cout) if k == 1 else (k, k, cin, cout)      # HWIO-style
        w = jax.random.normal(next(keys), shape, jnp.float32) * 0.2
        gamma = jax.random.uniform(next(keys), (cout,), jnp.float32, 0.5, 1.5)
        beta = jax.random.normal(next(keys), (cout,), jnp.float32) * 0.1
        mean = jax.random.normal(next(keys), (cout,), jnp.float32) * 0.1
        var = jax.random.uniform(next(keys), (cout,), jnp.float32, 0.5, 1.5)
        s = gamma / jnp.sqrt(var + eps)
        return w * s, (beta - mean * s).reshape(1, cout)

    p = {}
    p["b0_w"], p["b0_b"] = conv_bn(in_channels, 4, 1)
    p["b1_w1"], p["b1_b1"] = conv_bn(in_channels, 4, 1)
    p["b1_w2"], p["b1_b2"] = conv_bn(4, 4, 3)
    p["b2_w1"], p["b2_b1"] = conv_bn(in_channels, 4, 1)
    p["b2_w2"], p["b2_b2"] = conv_bn(4, 6, 3)
    p["b2_w3"], p["b2_b3"] = conv_bn(6, 8, 3)
    # final nn.Conv2d(16, in_channels, 1, bias=True) — plain conv, no BN/ReLU
    p["cw"] = jax.random.normal(next(keys), (16, in_channels), jnp.float32) * 0.2
    p["cb"] = (jax.random.normal(next(keys), (in_channels,), jnp.float32) * 0.1
               ).reshape(1, in_channels)
    return p


def ref_forward(x_nhwc, p, *, scale, activation):
    """Pure-JAX reference (lax.conv) on the same folded params, for checking."""
    dn = ("NHWC", "HWIO", "NHWC")

    def conv(x, w, pad):
        if w.ndim == 2:
            w = w.reshape(1, 1, *w.shape)
        return lax.conv_general_dilated(x, w, (1, 1), pad, dimension_numbers=dn,
                                        precision=lax.Precision.HIGHEST)

    relu = lambda v: jnp.maximum(v, 0.0)
    x0 = relu(conv(x_nhwc, p["b0_w"], "VALID") + p["b0_b"])
    x1 = relu(conv(x_nhwc, p["b1_w1"], "VALID") + p["b1_b1"])
    x1 = relu(conv(x1, p["b1_w2"], "SAME") + p["b1_b2"])
    x2 = relu(conv(x_nhwc, p["b2_w1"], "VALID") + p["b2_b1"])
    x2 = relu(conv(x2, p["b2_w2"], "SAME") + p["b2_b2"])
    x2 = relu(conv(x2, p["b2_w3"], "SAME") + p["b2_b3"])
    xres = jnp.concatenate([x0, x1, x2], axis=-1)
    xres = conv(xres, p["cw"], "VALID") + p["cb"]
    out = x_nhwc + scale * xres
    return relu(out) if activation else out


if __name__ == "__main__":
    key = jax.random.PRNGKey(0)
    k_x, k_p = jax.random.split(key)

    B, C, H, W = 2, 4, 16, 16
    scale, activation = 0.17, True

    x_nchw = jax.random.normal(k_x, (B, C, H, W), jnp.float32)
    params = make_params(k_p, C)

    out = inception_resnet_a_eighth(x_nchw, params, scale=scale, activation=activation)
    out = jax.block_until_ready(out)
    assert out.shape == (B, C, H, W) and out.dtype == jnp.float32

    # correctness check against a pure-JAX conv reference
    x_nhwc = jnp.transpose(x_nchw, (0, 2, 3, 1))
    ref = jnp.transpose(ref_forward(x_nhwc, params, scale=scale, activation=activation),
                        (0, 3, 1, 2))
    assert jnp.allclose(out, ref, atol=1e-3, rtol=1e-3), float(jnp.max(jnp.abs(out - ref)))

    print("KERNEL_OK")
</pallas_src>

<mosaic_0001>
module attributes {stable_mosaic.version = 11 : i64} {
  func.func @_kernel(%arg0: memref<2x4x256xf32, #tpu.memory_space<vmem>>, %arg1: memref<48x73xf32, #tpu.memory_space<vmem>>, %arg2: memref<8x512xf32, #tpu.memory_space<vmem>>, %arg3: memref<2x4x256xf32, #tpu.memory_space<vmem>>) attributes {dimension_semantics = [], scalar_prefetch = 0 : i64, scratch_operands = 0 : i64, tpu.core_type = #tpu.core_type<tc>} {
    %c0 = arith.constant 0 : index
    %c0_0 = arith.constant 0 : index
    %c0_1 = arith.constant 0 : index
    %0 = vector.load %arg0[%c0, %c0_0, %c0_1] : memref<2x4x256xf32, #tpu.memory_space<vmem>>, vector<1x4x256xf32>
    %1 = vector.shape_cast %0 : vector<1x4x256xf32> to vector<4x256xf32>
    %c1 = arith.constant 1 : index
    %c0_2 = arith.constant 0 : index
    %c0_3 = arith.constant 0 : index
    %2 = vector.load %arg0[%c1, %c0_2, %c0_3] : memref<2x4x256xf32, #tpu.memory_space<vmem>>, vector<1x4x256xf32>
    %3 = vector.shape_cast %2 : vector<1x4x256xf32> to vector<4x256xf32>
    %4 = tpu.concatenate %1, %3 in 1 : vector<4x256xf32>, vector<4x256xf32> -> vector<4x512xf32>
    %c0_4 = arith.constant 0 : index
    %c0_5 = arith.constant 0 : index
    %5 = vector.load %arg2[%c0_4, %c0_5] : memref<8x512xf32, #tpu.memory_space<vmem>>, vector<8x512xf32>
    %c0_6 = arith.constant 0 : index
    %c0_7 = arith.constant 0 : index
    %6 = vector.load %arg1[%c0_6, %c0_7] : memref<48x73xf32, #tpu.memory_space<vmem>>, vector<12x4xf32>
    %c0_8 = arith.constant 0 : index
    %c72 = arith.constant 72 : index
    %7 = vector.load %arg1[%c0_8, %c72] : memref<48x73xf32, #tpu.memory_space<vmem>>, vector<12x1xf32>
    %cst = arith.constant dense<0.000000e+00> : vector<12x512xf32>
    %8 = tpu.matmul %6, %4, %cst {dimension_numbers = #tpu.dot_dimension_numbers<[1], [0], [0], [1], [0, 0, 1, 1], [], []>} : vector<12x4xf32>, vector<4x512xf32>, vector<12x512xf32> -> vector<12x512xf32>
    %9 = vector.broadcast %7 : vector<12x1xf32> to vector<12x512xf32>
    %10 = arith.addf %8, %9 : vector<12x512xf32>
    %cst_9 = arith.constant 0.000000e+00 : f32
    %11 = vector.broadcast %cst_9 : f32 to vector<12x512xf32>
    %12 = arith.maximumf %10, %11 : vector<12x512xf32>
    %13 = vector.extract_strided_slice %12 {offsets = [0, 0], sizes = [8, 512], strides = [1, 1]} : vector<12x512xf32> to vector<8x512xf32>
    %c17_i32 = arith.constant 17 : i32
    %14 = tpu.dynamic_rotate %13 by %c17_i32 dim 1 : vector<8x512xf32>, i32 -> vector<8x512xf32>
    %15 = vector.extract_strided_slice %5 {offsets = [0, 0], sizes = [1, 512], strides = [1, 1]} : vector<8x512xf32> to vector<1x512xf32>
    %16 = vector.broadcast %15 : vector<1x512xf32> to vector<8x512xf32>
    %17 = arith.mulf %14, %16 : vector<8x512xf32>
    %c16_i32 = arith.constant 16 : i32
    %18 = tpu.dynamic_rotate %13 by %c16_i32 dim 1 : vector<8x512xf32>, i32 -> vector<8x512xf32>
    %19 = vector.extract_strided_slice %5 {offsets = [1, 0], sizes = [1, 512], strides = [1, 1]} : vector<8x512xf32> to vector<1x512xf32>
    %20 = vector.broadcast %19 : vector<1x512xf32> to vector<8x512xf32>
    %21 = arith.mulf %18, %20 : vector<8x512xf32>
    %c15_i32 = arith.constant 15 : i32
    %22 = tpu.dynamic_rotate %13 by %c15_i32 dim 1 : vector<8x512xf32>, i32 -> vector<8x512xf32>
    %23 = vector.extract_strided_slice %5 {offsets = [2, 0], sizes = [1, 512], strides = [1, 1]} : vector<8x512xf32> to vector<1x512xf32>
    %24 = vector.broadcast %23 : vector<1x512xf32> to vector<8x512xf32>
    %25 = arith.mulf %22, %24 : vector<8x512xf32>
    %c1_i32 = arith.constant 1 : i32
    %26 = tpu.dynamic_rotate %13 by %c1_i32 dim 1 : vector<8x512xf32>, i32 -> vector<8x512xf32>
    %27 = vector.extract_strided_slice %5 {offsets = [3, 0], sizes = [1, 512], strides = [1, 1]} : vector<8x512xf32> to vector<1x512xf32>
    %28 = vector.broadcast %27 : vector<1x512xf32> to vector<8x512xf32>
    %29 = arith.mulf %26, %28 : vector<8x512xf32>
    %c511_i32 = arith.constant 511 : i32
    %30 = tpu.dynamic_rotate %13 by %c511_i32 dim 1 : vector<8x512xf32>, i32 -> vector<8x512xf32>
    %31 = vector.extract_strided_slice %5 {offsets = [4, 0], sizes = [1, 512], strides = [1, 1]} : vector<8x512xf32> to vector<1x512xf32>
    %32 = vector.broadcast %31 : vector<1x512xf32> to vector<8x512xf32>
    %33 = arith.mulf %30, %32 : vector<8x512xf32>
    %c497_i32 = arith.constant 497 : i32
    %34 = tpu.dynamic_rotate %13 by %c497_i32 dim 1 : vector<8x512xf32>, i32 -> vector<8x512xf32>
    %35 = vector.extract_strided_slice %5 {offsets = [5, 0], sizes = [1, 512], strides = [1, 1]} : vector<8x512xf32> to vector<1x512xf32>
    %36 = vector.broadcast %35 : vector<1x512xf32> to vector<8x512xf32>
    %37 = arith.mulf %34, %36 : vector<8x512xf32>
    %c496_i32 = arith.constant 496 : i32
    %38 = tpu.dynamic_rotate %13 by %c496_i32 dim 1 : vector<8x512xf32>, i32 -> vector<8x512xf32>
    %39 = vector.extract_strided_slice %5 {offsets = [6, 0], sizes = [1, 512], strides = [1, 1]} : vector<8x512xf32> to vector<1x512xf32>
    %40 = vector.broadcast %39 : vector<1x512xf32> to vector<8x512xf32>
    %41 = arith.mulf %38, %40 : vector<8x512xf32>
    %c495_i32 = arith.constant 495 : i32
    %42 = tpu.dynamic_rotate %13 by %c495_i32 dim 1 : vector<8x512xf32>, i32 -> vector<8x512xf32>
    %43 = vector.extract_strided_slice %5 {offsets = [7, 0], sizes = [1, 512], strides = [1, 1]} : vector<8x512xf32> to vector<1x512xf32>
    %44 = vector.broadcast %43 : vector<1x512xf32> to vector<8x512xf32>
    %45 = arith.mulf %42, %44 : vector<8x512xf32>
    %46 = tpu.concatenate %17, %21, %25, %29, %13, %33, %37, %41, %45 in 0 : vector<8x512xf32>, vector<8x512xf32>, vector<8x512xf32>, vector<8x512xf32>, vector<8x512xf32>, vector<8x512xf32>, vector<8x512xf32>, vector<8x512xf32>, vector<8x512xf32> -> vector<72x512xf32>
    %c16 = arith.constant 16 : index
    %c0_10 = arith.constant 0 : index
    %47 = vector.load %arg1[%c16, %c0_10] : memref<48x73xf32, #tpu.memory_space<vmem>>, vector<12x72xf32>
    %c16_11 = arith.constant 16 : index
    %c72_12 = arith.constant 72 : index
    %48 = vector.load %arg1[%c16_11, %c72_12] : memref<48x73xf32, #tpu.memory_space<vmem>>, vector<12x1xf32>
    %cst_13 = arith.constant dense<0.000000e+00> : vector<12x512xf32>
    %49 = tpu.matmul %47, %46, %cst_13 {dimension_numbers = #tpu.dot_dimension_numbers<[1], [0], [0], [1], [0, 0, 1, 1], [], []>} : vector<12x72xf32>, vector<72x512xf32>, vector<12x512xf32> -> vector<12x512xf32>
    %50 = vector.broadcast %48 : vector<12x1xf32> to vector<12x512xf32>
    %51 = arith.addf %49, %50 : vector<12x512xf32>
    %cst_14 = arith.constant 0.000000e+00 : f32
    %52 = vector.broadcast %cst_14 : f32 to vector<12x512xf32>
    %53 = arith.maximumf %51, %52 : vector<12x512xf32>
    %54 = vector.extract_strided_slice %53 {offsets = [0, 0], sizes = [8, 512], strides = [1, 1]} : vector<12x512xf32> to vector<8x512xf32>
    %c17_i32_15 = arith.constant 17 : i32
    %55 = tpu.dynamic_rotate %54 by %c17_i32_15 dim 1 : vector<8x512xf32>, i32 -> vector<8x512xf32>
    %56 = vector.extract_strided_slice %5 {offsets = [0, 0], sizes = [1, 512], strides = [1, 1]} : vector<8x512xf32> to vector<1x512xf32>
    %57 = vector.broadcast %56 : vector<1x512xf32> to vector<8x512xf32>
    %58 = arith.mulf %55, %57 : vector<8x512xf32>
    %c16_i32_16 = arith.constant 16 : i32
    %59 = tpu.dynamic_rotate %54 by %c16_i32_16 dim 1 : vector<8x512xf32>, i32 -> vector<8x512xf32>
    %60 = vector.extract_strided_slice %5 {offsets = [1, 0], sizes = [1, 512], strides = [1, 1]} : vector<8x512xf32> to vector<1x512xf32>
    %61 = vector.broadcast %60 : vector<1x512xf32> to vector<8x512xf32>
    %62 = arith.mulf %59, %61 : vector<8x512xf32>
    %c15_i32_17 = arith.constant 15 : i32
    %63 = tpu.dynamic_rotate %54 by %c15_i32_17 dim 1 : vector<8x512xf32>, i32 -> vector<8x512xf32>
    %64 = vector.extract_strided_slice %5 {offsets = [2, 0], sizes = [1, 512], strides = [1, 1]} : vector<8x512xf32> to vector<1x512xf32>
    %65 = vector.broadcast %64 : vector<1x512xf32> to vector<8x512xf32>
    %66 = arith.mulf %63, %65 : vector<8x512xf32>
    %c1_i32_18 = arith.constant 1 : i32
    %67 = tpu.dynamic_rotate %54 by %c1_i32_18 dim 1 : vector<8x512xf32>, i32 -> vector<8x512xf32>
    %68 = vector.extract_strided_slice %5 {offsets = [3, 0], sizes = [1, 512], strides = [1, 1]} : vector<8x512xf32> to vector<1x512xf32>
    %69 = vector.broadcast %68 : vector<1x512xf32> to vector<8x512xf32>
    %70 = arith.mulf %67, %69 : vector<8x512xf32>
    %c511_i32_19 = arith.constant 511 : i32
    %71 = tpu.dynamic_rotate %54 by %c511_i32_19 dim 1 : vector<8x512xf32>, i32 -> vector<8x512xf32>
    %72 = vector.extract_strided_slice %5 {offsets = [4, 0], sizes = [1, 512], strides = [1, 1]} : vector<8x512xf32> to vector<1x512xf32>
    %73 = vector.broadcast %72 : vector<1x512xf32> to vector<8x512xf32>
    %74 = arith.mulf %71, %73 : vector<8x512xf32>
    %c497_i32_20 = arith.constant 497 : i32
    %75 = tpu.dynamic_rotate %54 by %c497_i32_20 dim 1 : vector<8x512xf32>, i32 -> vector<8x512xf32>
    %76 = vector.extract_strided_slice %5 {offsets = [5, 0], sizes = [1, 512], strides = [1, 1]} : vector<8x512xf32> to vector<1x512xf32>
    %77 = vector.broadcast %76 : vector<1x512xf32> to vector<8x512xf32>
    %78 = arith.mulf %75, %77 : vector<8x512xf32>
    %c496_i32_21 = arith.constant 496 : i32
    %79 = tpu.dynamic_rotate %54 by %c496_i32_21 dim 1 : vector<8x512xf32>, i32 -> vector<8x512xf32>
    %80 = vector.extract_strided_slice %5 {offsets = [6, 0], sizes = [1, 512], strides = [1, 1]} : vector<8x512xf32> to vector<1x512xf32>
    %81 = vector.broadcast %80 : vector<1x512xf32> to vector<8x512xf32>
    %82 = arith.mulf %79, %81 : vector<8x512xf32>
    %c495_i32_22 = arith.constant 495 : i32
    %83 = tpu.dynamic_rotate %54 by %c495_i32_22 dim 1 : vector<8x512xf32>, i32 -> vector<8x512xf32>
    %84 = vector.extract_strided_slice %5 {offsets = [7, 0], sizes = [1, 512], strides = [1, 1]} : vector<8x512xf32> to vector<1x512xf32>
    %85 = vector.broadcast %84 : vector<1x512xf32> to vector<8x512xf32>
    %86 = arith.mulf %83, %85 : vector<8x512xf32>
    %87 = tpu.concatenate %58, %62, %66, %70, %54, %74, %78, %82, %86 in 0 : vector<8x512xf32>, vector<8x512xf32>, vector<8x512xf32>, vector<8x512xf32>, vector<8x512xf32>, vector<8x512xf32>, vector<8x512xf32>, vector<8x512xf32>, vector<8x512xf32> -> vector<72x512xf32>
    %c32 = arith.constant 32 : index
    %c0_23 = arith.constant 0 : index
    %88 = vector.load %arg1[%c32, %c0_23] : memref<48x73xf32, #tpu.memory_space<vmem>>, vector<8x72xf32>
    %c32_24 = arith.constant 32 : index
    %c72_25 = arith.constant 72 : index
    %89 = vector.load %arg1[%c32_24, %c72_25] : memref<48x73xf32, #tpu.memory_space<vmem>>, vector<8x1xf32>
    %cst_26 = arith.constant dense<0.000000e+00> : vector<8x512xf32>
    %90 = tpu.matmul %88, %87, %cst_26 {dimension_numbers = #tpu.dot_dimension_numbers<[1], [0], [0], [1], [0, 0, 1, 1], [], []>} : vector<8x72xf32>, vector<72x512xf32>, vector<8x512xf32> -> vector<8x512xf32>
    %91 = vector.broadcast %89 : vector<8x1xf32> to vector<8x512xf32>
    %92 = arith.addf %90, %91 : vector<8x512xf32>
    %cst_27 = arith.constant 0.000000e+00 : f32
    %93 = vector.broadcast %cst_27 : f32 to vector<8x512xf32>
    %94 = arith.maximumf %92, %93 : vector<8x512xf32>
    %95 = vector.extract_strided_slice %12 {offsets = [8, 0], sizes = [4, 512], strides = [1, 1]} : vector<12x512xf32> to vector<4x512xf32>
    %96 = vector.extract_strided_slice %53 {offsets = [8, 0], sizes = [4, 512], strides = [1, 1]} : vector<12x512xf32> to vector<4x512xf32>
    %97 = tpu.concatenate %95, %96, %94 in 0 : vector<4x512xf32>, vector<4x512xf32>, vector<8x512xf32> -> vector<16x512xf32>
    %c40 = arith.constant 40 : index
    %c0_28 = arith.constant 0 : index
    %98 = vector.load %arg1[%c40, %c0_28] : memref<48x73xf32, #tpu.memory_space<vmem>>, vector<4x16xf32>
    %c40_29 = arith.constant 40 : index
    %c72_30 = arith.constant 72 : index
    %99 = vector.load %arg1[%c40_29, %c72_30] : memref<48x73xf32, #tpu.memory_space<vmem>>, vector<4x1xf32>
    %cst_31 = arith.constant dense<0.000000e+00> : vector<4x512xf32>
    %100 = tpu.matmul %98, %97, %cst_31 {dimension_numbers = #tpu.dot_dimension_numbers<[1], [0], [0], [1], [0, 0, 1, 1], [], []>} : vector<4x16xf32>, vector<16x512xf32>, vector<4x512xf32> -> vector<4x512xf32>
    %101 = vector.broadcast %99 : vector<4x1xf32> to vector<4x512xf32>
    %102 = arith.addf %100, %101 : vector<4x512xf32>
    %cst_32 = arith.constant 1.700000e-01 : f32
    %103 = vector.broadcast %cst_32 : f32 to vector<4x512xf32>
    %104 = arith.mulf %103, %102 : vector<4x512xf32>
    %105 = arith.addf %4, %104 : vector<4x512xf32>
    %cst_33 = arith.constant 0.000000e+00 : f32
    %106 = vector.broadcast %cst_33 : f32 to vector<4x512xf32>
    %107 = arith.maximumf %105, %106 : vector<4x512xf32>
    %108 = vector.extract_strided_slice %107 {offsets = [0, 0], sizes = [4, 256], strides = [1, 1]} : vector<4x512xf32> to vector<4x256xf32>
    %c0_34 = arith.constant 0 : index
    %c0_35 = arith.constant 0 : index
    %c0_36 = arith.constant 0 : index
    %109 = vector.load %arg3[%c0_34, %c0_35, %c0_36] : memref<2x4x256xf32, #tpu.memory_space<vmem>>, vector<1x4x256xf32>
    %110 = vector.shape_cast %109 : vector<1x4x256xf32> to vector<4x256xf32>
    %111 = vector.shape_cast %108 : vector<4x256xf32> to vector<1x4x256xf32>
    tpu.vector_store %arg3[%c0_34, %c0_35, %c0_36], %111 {strides = array<i32>} : memref<2x4x256xf32, #tpu.memory_space<vmem>>, vector<1x4x256xf32>,
    %112 = vector.extract_strided_slice %107 {offsets = [0, 256], sizes = [4, 256], strides = [1, 1]} : vector<4x512xf32> to vector<4x256xf32>
    %c1_37 = arith.constant 1 : index
    %c0_38 = arith.constant 0 : index
    %c0_39 = arith.constant 0 : index
    %113 = vector.load %arg3[%c1_37, %c0_38, %c0_39] : memref<2x4x256xf32, #tpu.memory_space<vmem>>, vector<1x4x256xf32>
    %114 = vector.shape_cast %113 : vector<1x4x256xf32> to vector<4x256xf32>
    %115 = vector.shape_cast %112 : vector<4x256xf32> to vector<1x4x256xf32>
    tpu.vector_store %arg3[%c1_37, %c0_38, %c0_39], %115 {strides = array<i32>} : memref<2x4x256xf32, #tpu.memory_space<vmem>>, vector<1x4x256xf32>,
    return
  }
}

</mosaic_0001>

<bundles_post_ra>
// kernel: tpu_custom_call.1
= control target key start
LH: loop header
LB: loop body
LE: loop exit
PB: predicated region body
PF: predicated region fallthrough
CT: control target
= control target key end

     0   :  { %8 = vsyncpa [#allocation3], 0  ;;  %s2078_s0 = inlined_call_operand.hbm [shape: f32[2,4,256], index: 0, kind: input, shape index: {}]   ;;  %s2079_s1 = inlined_call_operand.hbm [shape: f32[48,73], index: 1, kind: input, shape index: {}]   ;;  %s2080_s2 = inlined_call_operand.hbm [shape: f32[8,512], index: 2, kind: input, shape index: {}]   ;;  %s2081_s3 = inlined_call_operand.hbm [shape: f32[2,4,256], index: 3, kind: output, shape index: {}]  }
   0x1   :  { %9 = vsyncpa [#allocation6], 0 }
   0x2   :  { %10 = vsyncpa [#allocation4], 0  ;;  %s1394_s12 = smov [#allocation5]   ;;  %s1395_s14 = smov [#allocation2]  }
   0x3   :  { %s28_s13 = sshll.u32 %s1394_s12, 4  ;;  %s16_s15 = sshll.u32 %s1395_s14, 4  ;;  %s29_s13 = int_to_ptr.vmem [resolvable:$true] %s28_s13  ;;  %s1430_s15 = int_to_ptr.vmem [resolvable:$true] %s16_s15 }
   0x4   :  { %s1300_s18 = scalar_lea.hbm %s2079_s1, 768 }
   0x5   :  { %p1301_p0 = scmp.ne.s32.totalorder %s2079_s1, %s1300_s18  ;;  %p1304_p1 = scmp.lt.u32.totalorder %s1300_s18, %s2079_s1 }
   0x7   :  { %p1306_p2 = pnand %p1304_p1, %p1301_p0 }
   0x9   :  { %1309 = shalt.err (!%p1306_p2)
}
   0xa   :  { %s1310_s23 = scalar_lea.vmem %s29_s13, 768  ;;  %p1315_p4 = scmp.lt.s32.totalorder %s29_s13, %s29_s13 }
   0xb   :  { %p1311_p3 = scmp.ne.s32.totalorder %s29_s13, %s1310_s23  ;;  %p1316_p5 = scmp.lt.s32.totalorder %s1310_s23, %s1310_s23 }
   0xd   :  { %p1317_p6 = por %p1316_p5, %p1315_p4 }
   0xf   :  { %p1318_p7 = pnand %p1317_p6, %p1311_p3 }
  0x11   :  { %1321 = shalt.err (!%p1318_p7)
}
  0x12   :  { %s1396_s24 = smov 128   ;;  %s1397_s25 = smov 8  }
  0x13   :  { %34 = dma.hbm_to_vmem [thread:$0]  %s2079_s1, 768, %s29_s13, [#allocation6], %s1396_s24, %s1396_s24, %s1397_s25  }
  0x14   :  { %s1322_s30 = scalar_lea.hbm %s2078_s0, 256 }
  0x15   :  { %p1323_p8 = scmp.ne.s32.totalorder %s2078_s0, %s1322_s30  ;;  %p1326_p9 = scmp.lt.u32.totalorder %s1322_s30, %s2078_s0 }
  0x17   :  { %p1328_p10 = pnand %p1326_p9, %p1323_p8 }
  0x19   :  { %1331 = shalt.err (!%p1328_p10)
}
  0x1a   :  { %s1332_s8 = scalar_lea.vmem %s1430_s15, 256  ;;  %p1337_p12 = scmp.lt.s32.totalorder %s1430_s15, %s1430_s15 }
  0x1b   :  { %p1333_p11 = scmp.ne.s32.totalorder %s1430_s15, %s1332_s8  ;;  %p1338_p13 = scmp.lt.s32.totalorder %s1332_s8, %s1332_s8 }
  0x1d   :  { %p1339_p0 = por %p1338_p13, %p1337_p12 }
  0x1f   :  { %p1340_p1 = pnand %p1339_p0, %p1333_p11 }
  0x21   :  { %1343 = shalt.err (!%p1340_p1)
}
  0x22   :  { %22 = dma.hbm_to_vmem [thread:$0]  %s2078_s0, 256, %s1430_s15, [#allocation3], %s1396_s24, %s1396_s24, %s1397_s25  }
  0x23   :  { %s1398_s10 = smov [#allocation7]   ;;  %s1344_s14 = scalar_lea.hbm %s2080_s2, 512 }
  0x24   :  { %s41_s11 = sshll.u32 %s1398_s10, 4  ;;  %p1345_p2 = scmp.ne.s32.totalorder %s2080_s2, %s1344_s14  ;;  %s42_s11 = int_to_ptr.vmem [resolvable:$true] %s41_s11 }
  0x25   :  { %p1348_p3 = scmp.lt.u32.totalorder %s1344_s14, %s2080_s2 }
  0x27   :  { %p1350_p4 = pnand %p1348_p3, %p1345_p2 }
  0x29   :  { %1353 = shalt.err (!%p1350_p4)
}
  0x2a   :  { %s1354_s20 = scalar_lea.vmem %s42_s11, 512  ;;  %p1359_p6 = scmp.lt.s32.totalorder %s42_s11, %s42_s11 }
  0x2b   :  { %p1355_p5 = scmp.ne.s32.totalorder %s42_s11, %s1354_s20  ;;  %p1360_p7 = scmp.lt.s32.totalorder %s1354_s20, %s1354_s20 }
  0x2d   :  { %p1361_p8 = por %p1360_p7, %p1359_p6 }
  0x2f   :  { %p1362_p9 = pnand %p1361_p8, %p1355_p5 }
  0x31   :  { %1365 = shalt.err (!%p1362_p9)
}
  0x32   :  { %44 = dma.hbm_to_vmem [thread:$0]  %s2080_s2, 512, %s42_s11, [#allocation6]  }
  0x33   :  { %1388 = dma.done.wait [#allocation3], 256  }
  0x34   :  { %1389 = vsyncadd [#allocation3], 4294967040 }
  0x35   :  { %1390 = dma.done.wait [#allocation6], 1280  }
  0x36   :  { %1391 = vsyncadd [#allocation6], 4294966016  ;;  %v2082_v0 = vmov 0.0   ;;  %v1400_v1 = vmov 72   ;;  %v54_v2 = vld [vmem:[#allocation2] sm:$0xff]  ;;  %vm84_vm0 = vcmask 1043456   ;;  %v263_v22 = vlaneseq }
  0x37   :  { %157 = vmatprep.mubr.f32.mxu0 %v2082_v0  ;;  %234 = vmatprep.mubr.f32.mxu1 %v2082_v0  ;;  %v56_v3 = vld [vmem:[#allocation2 + $0x8] sm:$0xff]  ;;  %v67_v4 = vld [vmem:[#allocation5] sm:$0xff]  ;;  %v1481_v5 = vcombine.high %v54_v2, %v54_v2  ;;  %vm79_vm1 = vcmask 31744   ;;  %s1401_s2 = smov 17   ;;  %s1402_s21 = smov 16   ;;  %v1575_v21 = vld [vmem:[#allocation5 + $0x10] sm:$0xff] }
  0x38   :  { %1294 = vset.pattern.permute.xlu0 %v1400_v1  ;;  %1295 = vset.pattern.permute.xlu1 %v1400_v1  ;;  %v1483_v6 = vcombine.high %v56_v3, %v56_v3  ;;  %s1403_s22 = smov 15   ;;  %s1404_s23 = smov 1   ;;  %v1551_v20 = vld [vmem:[#allocation5 + $0x8] sm:$0xf]  ;;  %v1582_v25 = vshrl.u32 %v263_v22, 7  ;;  %v1584_v27 = vand.u32 127, %v263_v22 }
  0x39   :  { %2090 = vst [vmem:[#allocation12_spill] sm:$0xff] %v1481_v5  ;;  %71 = vperm.xlu0 %1294, %v67_v4   ;;  %1190 = vmatprep.subr.msk.mxu0 %vm84_vm0, %v1481_v5  ;;  %s1405_s26 = smov 127   ;;  %s1406_s27 = smov 113   ;;  %v1587_v30 = vld [vmem:[#allocation7 + $0x18] sm:$0xff]  ;;  %v1611_v49 = vld [vmem:[#allocation7] sm:$0xff]  ;;  %v1613_v50 = vld [vmem:[#allocation7 + $0x8] sm:$0xff] }
  0x3a   :  { %2091 = vst [vmem:[#allocation13_spill] sm:$0xff] %v1483_v6  ;;  %1194 = vmatprep.subr.msk.mxu1 %vm84_vm0, %v1483_v6  ;;  %1191 = vmatpush1.msk.msra.mxu0 %vm84_vm0, %v54_v2  ;;  %s1407_s28 = smov 112   ;;  %s1408_s29 = smov 111   ;;  %v272_v29 = vsub.s32 0, %v1582_v25  ;;  %vm265_vm2 = vcmp.lt.s32.totalorder %v1584_v27, 17  ;;  %v305_v32 = vsub.s32 1, %v1582_v25 }
  0x3b   :  { %1195 = vmatpush1.msk.msra.mxu1 %vm84_vm0, %v56_v3  ;;  %1192 = vmatmul.mubr.msk.f32.vlgmr.msra.gmra.mrb[0].mxu0 %vm79_vm1, %v67_v4  ;;  %vm298_vm3 = vcmp.lt.s32.totalorder %v1584_v27, 16  ;;  %v1615_v51 = vld [vmem:[#allocation7 + $0x10] sm:$0xff]  ;;  %v338_v52 = vsub.s32 2, %v1582_v25  ;;  %v371_v55 = vsub.s32 3, %v1582_v25  ;;  %v404_v60 = vsub.s32 4, %v1582_v25  ;;  %s1409_s30 = smov [#allocation8]  }
  0x3c   :  { %1196 = vmatmul.mubr.msk.f32.vlgmr.msra.gmra.mrb[0].mxu1 %vm79_vm1, %v67_v4  ;;  %163 = vmatprep.mubr.f32.mxu0 %v2082_v0  ;;  %v1592_v34 = vrot.slane %v1587_v30, %v272_v29  ;;  %v1595_v35 = vrot.slane %v1587_v30, %v305_v32  ;;  %v1622_v56 = vrot.slane %v1611_v49, %v272_v29  ;;  %vm331_vm4 = vcmp.lt.s32.totalorder %v1584_v27, 15  ;;  %s1177_s4 = sshll.u32 %s1409_s30, 4  ;;  %s1178_s4 = int_to_ptr.vmem [resolvable:$true] %s1177_s4 }
  0x3d   :  { %240 = vmatprep.mubr.f32.mxu1 %v2082_v0  ;;  %v1625_v57 = vrot.slane %v1613_v50, %v305_v32  ;;  %v1628_v58 = vrot.slane %v1615_v51, %v305_v32  ;;  %v1631_v59 = vrot.slane %v1611_v49, %v305_v32  ;;  %v1638_v62 = vrot.slane %v1613_v50, %v338_v52  ;;  %s1366_s5 = scalar_lea.vmem %s1178_s4, 256  ;;  %p1371_p11 = scmp.lt.s32.totalorder %s1178_s4, %s1178_s4 }
  0x3e   :  { %2092 = vst [vmem:[#allocation14_spill] sm:$0xff] %v1595_v35  ;;  %v1641_v63 = vrot.slane %v1615_v51, %v338_v52  ;;  %v1644_v3 = vrot.slane %v1611_v49, %v338_v52  ;;  %v1647_v4 = vrot.slane %v1587_v30, %v338_v52  ;;  %vm364_vm5 = vcmp.lt.s32.totalorder %v1584_v27, 1  ;;  %p1367_p10 = scmp.ne.s32.totalorder %s1178_s4, %s1366_s5  ;;  %p1372_p12 = scmp.lt.s32.totalorder %s1366_s5, %s1366_s5 }
  0x3f   :  { %1193 = vmatmul.mubr.msk.f32.gmra.mrb[2].mxu0 %vm79_vm1, %v1551_v20  ;;  %vm397_vm6 = vcmp.lt.s32.totalorder %v1584_v27, 127  ;;  %v1680_v32 = vrot.slane %v1615_v51, %v404_v60  ;;  %vm430_vm7 = vcmp.lt.s32.totalorder %v1584_v27, 113  ;;  %vm463_vm8 = vcmp.lt.s32.totalorder %v1584_v27, 112 }
  0x40   :  { %1197 = vmatmul.mubr.msk.f32.gmra.mrb[2].mxu1 %vm79_vm1, %v1551_v20  ;;  %602 = vmatprep.mubr.f32.mxu0 %v2082_v0  ;;  %2093 = vst [vmem:[#allocation15_spill] sm:$0xff] %v1647_v4  ;;  %vm496_vm9 = vcmp.lt.s32.totalorder %v1584_v27, 111  ;;  %vm533_vm10 = vcmask 588800   ;;  %vm1004_vm11 = vcmask 130048   ;;  %p1373_p13 = por %p1372_p12, %p1371_p11 }
  0x41   :  { %679 = vmatprep.mubr.f32.mxu1 %v2082_v0 }
  0x42   :  { %p1374_p0 = pnand %p1373_p13, %p1367_p10 }
  0xb8   :  { %v72_v7 = vpop.permute.xlu0 %71 }
 0x10e   :  { %v159_v8 = vpop.f32.mrb[0].mxu0 }
 0x10f   :  { %v236_v9 = vpop.f32.mrb[0].mxu1  ;;  %v160_v10 = vadd.f32 %v159_v8, %v72_v7  ;;  %v161_v12 = vpop.f32.mrb[1].mxu0 }
 0x110   :  { %v237_v11 = vadd.f32 %v236_v9, %v72_v7  ;;  %v238_v13 = vpop.f32.mrb[1].mxu1  ;;  %v162_v17 = vadd.f32 %v161_v12, %v72_v7  ;;  %v1657_v9 = vrot.slane %v1615_v51, %v371_v55 }
 0x111   :  { %v1495_v14 = vmax.f32 %v160_v10, 0.0  ;;  %v239_v16 = vadd.f32 %v238_v13, %v72_v7  ;;  %v1651_v7 = vrot.slane %v1613_v50, %v371_v55  ;;  %v1660_v10 = vrot.slane %v1611_v49, %v371_v55 }
 0x112   :  { %v1497_v15 = vmax.f32 %v237_v11, 0.0  ;;  %v1509_v19 = vmax.f32 %v162_v17, 0.0  ;;  %v1663_v11 = vrot.slane %v1587_v30, %v371_v55  ;;  %v1668_v13 = vrot.slane %v1611_v49, %v404_v60 }
 0x113   :  { %255 = vrot.lane.b32.xlu0 %v1495_v14, %s1401_s2  ;;  %v1503_v18 = vmax.f32 %v239_v16, 0.0  ;;  %2094 = vst [vmem:[#allocation16_spill] sm:$0xff] %v1651_v7  ;;  %v1671_v16 = vrot.slane %v1613_v50, %v404_v60 }
 0x114   :  { %259 = vrot.lane.b32.xlu1 %v1497_v15, %s1401_s2  ;;  %2095 = vst [vmem:[#allocation17_spill] sm:$0xff] %v1663_v11 }
 0x117   :  { %261 = vrot.lane.b32.xlu0 %v1503_v18, %s1401_s2 }
 0x118   :  { %290 = vrot.lane.b32.xlu1 %v1495_v14, %s1402_s21 }
 0x11b   :  { %292 = vrot.lane.b32.xlu0 %v1509_v19, %s1402_s21 }
 0x11c   :  { %294 = vrot.lane.b32.xlu1 %v1497_v15, %s1402_s21 }
 0x11f   :  { %296 = vrot.lane.b32.xlu0 %v1503_v18, %s1402_s21 }
 0x120   :  { %323 = vrot.lane.b32.xlu1 %v1495_v14, %s1403_s22 }
 0x123   :  { %325 = vrot.lane.b32.xlu0 %v1509_v19, %s1403_s22 }
 0x124   :  { %327 = vrot.lane.b32.xlu1 %v1497_v15, %s1403_s22 }
 0x127   :  { %329 = vrot.lane.b32.xlu0 %v1503_v18, %s1403_s22 }
 0x128   :  { %356 = vrot.lane.b32.xlu1 %v1495_v14, %s1404_s23 }
 0x12b   :  { %358 = vrot.lane.b32.xlu0 %v1509_v19, %s1404_s23 }
 0x12c   :  { %360 = vrot.lane.b32.xlu1 %v1497_v15, %s1404_s23 }
 0x12f   :  { %362 = vrot.lane.b32.xlu0 %v1503_v18, %s1404_s23 }
 0x130   :  { %389 = vrot.lane.b32.xlu1 %v1495_v14, %s1405_s26 }
 0x133   :  { %391 = vrot.lane.b32.xlu0 %v1509_v19, %s1405_s26 }
 0x134   :  { %393 = vrot.lane.b32.xlu1 %v1497_v15, %s1405_s26 }
 0x137   :  { %395 = vrot.lane.b32.xlu0 %v1503_v18, %s1405_s26 }
 0x138   :  { %422 = vrot.lane.b32.xlu1 %v1495_v14, %s1406_s27 }
 0x13b   :  { %424 = vrot.lane.b32.xlu0 %v1509_v19, %s1406_s27 }
 0x13c   :  { %257 = vrot.lane.b32.xlu1 %v1509_v19, %s1401_s2 }
 0x13f   :  { %428 = vrot.lane.b32.xlu0 %v1503_v18, %s1406_s27 }
 0x140   :  { %426 = vrot.lane.b32.xlu1 %v1497_v15, %s1406_s27 }
 0x143   :  { %457 = vrot.lane.b32.xlu0 %v1509_v19, %s1407_s28 }
 0x144   :  { %455 = vrot.lane.b32.xlu1 %v1495_v14, %s1407_s28 }
 0x147   :  { %461 = vrot.lane.b32.xlu0 %v1503_v18, %s1407_s28 }
 0x148   :  { %459 = vrot.lane.b32.xlu1 %v1497_v15, %s1407_s28 }
 0x14b   :  { %490 = vrot.lane.b32.xlu0 %v1509_v19, %s1408_s29 }
 0x14c   :  { %488 = vrot.lane.b32.xlu1 %v1495_v14, %s1408_s29 }
 0x14f   :  { %494 = vrot.lane.b32.xlu0 %v1503_v18, %s1408_s29 }
 0x150   :  { %492 = vrot.lane.b32.xlu1 %v1497_v15, %s1408_s29 }
 0x154   :  { %525 = vperm.xlu1 %1295, %v1575_v21  }
 0x185   :  { %v1580_v24 = vpop.permute.xlu0 %255 }
 0x186   :  { %v1578_v23 = vpop.permute.xlu1 %259 }
 0x189   :  { %v262_v28 = vpop.permute.xlu0 %261 }
 0x18a   :  { %v291_v26 = vpop.permute.xlu1 %290  ;;  %v266_v36 = vsel %vm265_vm2, %v1578_v23, %v262_v28  ;;  %v269_v8 = vsel %vm265_vm2, %v262_v28, %v1580_v24 }
 0x18b   :  { %v289_v40 = vmul.f32 %v1592_v34, %v266_v36 }
 0x18d   :  { %v293_v33 = vpop.permute.xlu0 %292 }
 0x18e   :  { %v295_v31 = vpop.permute.xlu1 %294  ;;  %v301_v22 = vsel %vm298_vm3, %v291_v26, %v293_v33 }
 0x18f   :  { %v300_v17 = vsel %vm298_vm3, %v293_v33, %v295_v31  ;;  %v320_v55 = vmul.f32 %v1625_v57, %v301_v22 }
 0x191   :  { %v297_v38 = vpop.permute.xlu0 %296 }
 0x192   :  { %v1601_v37 = vpop.permute.xlu1 %323  ;;  %v299_v39 = vsel %vm298_vm3, %v295_v31, %v297_v38  ;;  %v302_v61 = vsel %vm298_vm3, %v297_v38, %v291_v26  ;;  %v1683_v38 = vsub.s32 5, %v1582_v25  ;;  %v1693_v31 = vrot.slane %v1615_v51, %v272_v29 }
 0x193   :  { %v322_v41 = vmul.f32 %v1595_v35, %v299_v39  ;;  %v319_v12 = vmul.f32 %v1631_v59, %v302_v61  ;;  %v286_v39 = vmul.f32 %v1622_v56, %v269_v8  ;;  %v470_v61 = vsub.s32 6, %v1582_v25 }
 0x194   :  { %v1706_v52 = vrot.slane %v1615_v51, %v1683_v38 }
 0x195   :  { %v326_v43 = vpop.permute.xlu0 %325  ;;  %v1222_v44 = vpack.c.bf16 %v322_v41, %v289_v40  ;;  %v1687_v40 = vrot.slane %v1587_v30, %v404_v60  ;;  %v1690_v41 = vrot.slane %v1613_v50, %v272_v29  ;;  %v321_v29 = vmul.f32 %v1628_v58, %v300_v17 }
 0x196   :  { %v328_v42 = vpop.permute.xlu1 %327  ;;  %v1208_v60 = vpack.c.bf16 %v319_v12, %v286_v39  ;;  %v334_v0 = vsel %vm331_vm4, %v1601_v37, %v326_v43 }
 0x197   :  { %1223 = vmatprep.subr.bf16.mxu1 %v1222_v44  ;;  %v1702_v44 = vrot.slane %v1613_v50, %v1683_v38  ;;  %v333_v8 = vsel %vm331_vm4, %v326_v43, %v328_v42 }
 0x199   :  { %v1609_v46 = vpop.permute.xlu0 %329 }
 0x19a   :  { %v1607_v45 = vpop.permute.xlu1 %356  ;;  %v332_v6 = vsel %vm331_vm4, %v328_v42, %v1609_v46 }
 0x19d   :  { %v359_v48 = vpop.permute.xlu0 %358 }
 0x19e   :  { %v361_v47 = vpop.permute.xlu1 %360  ;;  %v367_v26 = vsel %vm364_vm5, %v1607_v45, %v359_v48 }
 0x19f   :  { %v366_v5 = vsel %vm364_vm5, %v359_v48, %v361_v47  ;;  %v386_v12 = vmul.f32 %v1651_v7, %v367_v26 }
 0x1a1   :  { %v363_v54 = vpop.permute.xlu0 %362 }
 0x1a2   :  { %v1618_v53 = vpop.permute.xlu1 %389  ;;  %v365_v33 = vsel %vm364_vm5, %v361_v47, %v363_v54  ;;  %v368_v42 = vsel %vm364_vm5, %v363_v54, %v1607_v45  ;;  %v387_v54 = vmul.f32 %v1657_v9, %v366_v5 }
 0x1a3   :  { %v388_v17 = vmul.f32 %v1663_v11, %v365_v33  ;;  %v353_v33 = vmul.f32 %v1638_v62, %v334_v0  ;;  %v385_v7 = vmul.f32 %v1660_v10, %v368_v42  ;;  %v1768_v42 = vrot.slane %v1613_v50, %v470_v61 }
 0x1a5   :  { %v392_v2 = vpop.permute.xlu0 %391 }
 0x1a6   :  { %v394_v1 = vpop.permute.xlu1 %393 }
 0x1a7   :  { %v399_v45 = vsel %vm397_vm6, %v392_v2, %v394_v1 }
 0x1a8   :  { %v419_v5 = vmul.f32 %v1671_v16, %v399_v45  ;;  %v1787_v45 = vrot.slane %v1611_v49, %v1683_v38 }
 0x1a9   :  { %v396_v36 = vpop.permute.xlu0 %395 }
 0x1aa   :  { %v1677_v28 = vpop.permute.xlu1 %422  ;;  %v401_v47 = vsel %vm397_vm6, %v396_v36, %v1618_v53 }
 0x1ad   :  { %v425_v35 = vpop.permute.xlu0 %424 }
 0x1ae   :  { %v258_v22 = vpop.permute.xlu1 %257 }
 0x1af   :  { %v267_v39 = vsel %vm265_vm2, %v258_v22, %v1578_v23  ;;  %v268_v43 = vsel %vm265_vm2, %v1580_v24, %v258_v22  ;;  %v335_v23 = vsel %vm331_vm4, %v1609_v46, %v1601_v37  ;;  %v355_v24 = vmul.f32 %v1647_v4, %v332_v6 }
 0x1b0   :  { %v287_v48 = vmul.f32 %v1690_v41, %v268_v43  ;;  %v288_v26 = vmul.f32 %v1693_v31, %v267_v39  ;;  %v400_v22 = vsel %vm397_vm6, %v1618_v53, %v392_v2  ;;  %v398_v37 = vsel %vm397_vm6, %v394_v1, %v396_v36 }
 0x1b1   :  { %v429_v11 = vpop.permute.xlu0 %428  ;;  %v421_v6 = vmul.f32 %v1687_v40, %v401_v47  ;;  %v1226_v46 = vpack.c.bf16 %v388_v17, %v355_v24  ;;  %v354_v4 = vmul.f32 %v1641_v63, %v333_v8  ;;  %v1210_v53 = vpack.c.bf16 %v386_v12, %v353_v33 }
 0x1b2   :  { %v1224_v43 = vpack.c.bf16 %v321_v29, %v288_v26  ;;  %v427_v39 = vpop.permute.xlu1 %426  ;;  %v1206_v0 = vpack.c.bf16 %v320_v55, %v287_v48  ;;  %v352_v2 = vmul.f32 %v1644_v3, %v335_v23  ;;  %v418_v55 = vmul.f32 %v1668_v13, %v400_v22 }
 0x1b3   :  { %v1760_v29 = vrot.slane %v1587_v30, %v1683_v38  ;;  %v1228_v1 = vpack.c.bf16 %v387_v54, %v354_v4  ;;  %v420_v36 = vmul.f32 %v1680_v32, %v398_v37  ;;  %v1765_v17 = vrot.slane %v1611_v49, %v470_v61 }
 0x1b4   :  { %1207 = vmatprep.subr.bf16.mxu0 %v1206_v0  ;;  %1225 = vmatpush1.bf16.msra.mxu1 %v1224_v43  ;;  %v1212_v47 = vpack.c.bf16 %v385_v7, %v352_v2  ;;  %v432_v48 = vsel %vm430_vm7, %v425_v35, %v427_v39  ;;  %v1230_v4 = vpack.c.bf16 %v421_v6, %v1503_v18 }
 0x1b5   :  { %1209 = vmatpush1.bf16.msra.mxu0 %v1208_v60  ;;  %1227 = vmatprep.subr.bf16.mxu1 %v1226_v46  ;;  %v458_v12 = vpop.permute.xlu0 %457  ;;  %v431_v60 = vsel %vm430_vm7, %v427_v39, %v429_v11  ;;  %v1214_v33 = vpack.c.bf16 %v419_v5, %v1509_v19  ;;  %v1779_v23 = vrot.slane %v1615_v51, %v470_v61  ;;  %v503_v46 = vsub.s32 7, %v1582_v25 }
 0x1b6   :  { %v456_v8 = vpop.permute.xlu1 %455  ;;  %1211 = vmatprep.subr.bf16.mxu0 %v1210_v53  ;;  %v1782_v24 = vrot.slane %v1587_v30, %v470_v61  ;;  %v1216_v7 = vpack.c.bf16 %v418_v55, %v1495_v14  ;;  %v434_v18 = vsel %vm430_vm7, %v429_v11, %v1677_v28  ;;  %v1232_v19 = vpack.c.bf16 %v420_v36, %v1497_v15 }
 0x1b7   :  { %v466_v26 = vsel %vm463_vm8, %v456_v8, %v458_v12  ;;  %v433_v54 = vsel %vm430_vm7, %v1677_v28, %v425_v35  ;;  %v452_v61 = vmul.f32 %v1702_v44, %v432_v48  ;;  %v453_v14 = vmul.f32 %v1706_v52, %v431_v60 }
 0x1b8   :  { %1229 = vmatpush1.bf16.msra.mxu1 %v1228_v1  ;;  %v484_v43 = vmul.f32 %v1765_v17, %v466_v26  ;;  %v454_v35 = vmul.f32 %v1760_v29, %v434_v18  ;;  %v451_v6 = vmul.f32 %v1787_v45, %v433_v54  ;;  %v1822_v25 = vrot.slane %v1611_v49, %v503_v46  ;;  %v1846_v54 = vpop.f32.mrb[2].mxu0 }
 0x1b9   :  { %1213 = vmatpush1.bf16.msra.mxu0 %v1212_v47  ;;  %1231 = vmatprep.subr.bf16.mxu1 %v1230_v4  ;;  %v462_v38 = vpop.permute.xlu0 %461  ;;  %v1819_v47 = vrot.slane %v1587_v30, %v503_v46  ;;  %v2096_v18 = vmov 0.0  }
 0x1ba   :  { %v460_v22 = vpop.permute.xlu1 %459  ;;  %1215 = vmatprep.subr.bf16.mxu0 %v1214_v33  ;;  %v467_v15 = vsel %vm463_vm8, %v462_v38, %v456_v8  ;;  %v1220_v36 = vpack.c.bf16 %v484_v43, %v451_v6  ;;  %v1813_v8 = vrot.slane %v1613_v50, %v503_v46 }
 0x1bb   :  { %v465_v11 = vsel %vm463_vm8, %v458_v12, %v460_v22  ;;  %v464_v39 = vsel %vm463_vm8, %v460_v22, %v462_v38  ;;  %v487_v37 = vmul.f32 %v1782_v24, %v467_v15  ;;  %v1816_v12 = vrot.slane %v1615_v51, %v503_v46 }
 0x1bc   :  { %v485_v28 = vmul.f32 %v1768_v42, %v465_v11  ;;  %v486_v0 = vmul.f32 %v1779_v23, %v464_v39  ;;  %1233 = vmatpush1.bf16.msra.mxu1 %v1232_v19  ;;  %v522_v19 = vld [vmem:[#allocation5 + $0x18] sm:$0xf] }
 0x1bd   :  { %1217 = vmatpush1.bf16.msra.mxu0 %v1216_v7  ;;  %v491_v2 = vpop.permute.xlu0 %490  ;;  %v1234_v1 = vpack.c.bf16 %v487_v37, %v454_v35 }
 0x1be   :  { %v1236_v5 = vpack.c.bf16 %v486_v0, %v453_v14  ;;  %v489_v53 = vpop.permute.xlu1 %488  ;;  %v1218_v55 = vpack.c.bf16 %v485_v28, %v452_v61  ;;  %v1848_v61 = vpop.f32.mrb[2].mxu1 }
 0x1bf   :  { %1235 = vmatprep.subr.bf16.mxu1 %v1234_v1  ;;  %v499_v48 = vsel %vm496_vm9, %v489_v53, %v491_v2  ;;  %v1850_v14 = vpop.f32.mrb[3].mxu0 }
 0x1c0   :  { %1219 = vmatprep.subr.bf16.mxu0 %v1218_v55  ;;  %1237 = vmatpush1.bf16.msra.mxu1 %v1236_v5  ;;  %v517_v7 = vmul.f32 %v1822_v25, %v499_v48  ;;  %v1937_v48 = vld [vmem:[#allocation5 + $0x28] sm:$0xf] }
 0x1c1   :  { %1221 = vmatpush1.bf16.msra.mxu0 %v1220_v36  ;;  %v495_v4 = vpop.permute.xlu0 %494  ;;  %v1935_v36 = vld [vmem:[#allocation5 + $0x20] sm:$0xff] }
 0x1c2   :  { %v493_v60 = vpop.permute.xlu1 %492  ;;  %v500_v30 = vsel %vm496_vm9, %v495_v4, %v489_v53 }
 0x1c3   :  { %v498_v50 = vsel %vm496_vm9, %v491_v2, %v493_v60  ;;  %v497_v51 = vsel %vm496_vm9, %v493_v60, %v495_v4  ;;  %v520_v33 = vmul.f32 %v1819_v47, %v500_v30 }
 0x1c4   :  { %v518_v26 = vmul.f32 %v1813_v8, %v498_v50  ;;  %v519_v49 = vmul.f32 %v1816_v12, %v497_v51 }
 0x1c5   :  { %631 = vmatprep.subr.mxu1 %v520_v33 }
 0x1c6   :  { %554 = vmatprep.subr.mxu0 %v518_v26  ;;  %632 = vmatpush1.msra.mxu1 %v519_v49 }
 0x1c7   :  { %555 = vmatpush1.msra.mxu0 %v517_v7  ;;  %1200 = vmatmul.mubr.msk.f32.vlgmr.msra.gmra.mrb[4].mxu1 %vm533_vm10, %v1575_v21 }
 0x1c8   :  { %1198 = vmatmul.mubr.msk.f32.vlgmr.msra.gmra.mrb[4].mxu0 %vm533_vm10, %v1575_v21  ;;  %685 = vmatprep.mubr.f32.mxu1 %v2096_v18  ;;  %v1852_v21 = vpop.f32.mrb[3].mxu1 }
 0x1c9   :  { %608 = vmatprep.mubr.f32.mxu0 %v2096_v18 }
 0x1cb   :  { %1201 = vmatmul.mubr.msk.f32.gmra.mrb[6].mxu1 %vm533_vm10, %v522_v19 }
 0x1cc   :  { %1199 = vmatmul.mubr.msk.f32.gmra.mrb[6].mxu0 %vm533_vm10, %v522_v19  ;;  %971 = vmatprep.mubr.f32.mxu1 %v2096_v18 }
 0x1cd   :  { %900 = vmatprep.mubr.f32.mxu0 %v2096_v18 }
 0x1d3   :  { %v526_v22 = vpop.permute.xlu1 %525 }
 0x29a   :  { %v681_v43 = vpop.f32.mrb[4].mxu1 }
 0x29b   :  { %v604_v38 = vpop.f32.mrb[4].mxu0  ;;  %v683_v15 = vpop.f32.mrb[5].mxu1  ;;  %v682_v0 = vadd.f32 %v681_v43, %v526_v22 }
 0x29c   :  { %v605_v11 = vadd.f32 %v604_v38, %v526_v22  ;;  %v606_v39 = vpop.f32.mrb[5].mxu0  ;;  %v684_v6 = vadd.f32 %v683_v15, %v526_v22 }
 0x29d   :  { %v607_v35 = vadd.f32 %v606_v39, %v526_v22  ;;  %v1862_v46 = vmax.f32 %v682_v0, 0.0 }
 0x29e   :  { %v1854_v28 = vmax.f32 %v605_v11, 0.0  ;;  %v1864_v5 = vmax.f32 %v684_v6, 0.0  ;;  %v1920_v2 = vpop.f32.mrb[6].mxu1 }
 0x29f   :  { %v1856_v37 = vmax.f32 %v607_v35, 0.0  ;;  %v1918_v53 = vpop.f32.mrb[6].mxu0  ;;  %v1924_v1 = vpop.f32.mrb[7].mxu1 }
 0x2a0   :  { %700 = vrot.lane.b32.xlu0 %v1854_v28, %s1401_s2  ;;  %v1922_v55 = vpop.f32.mrb[7].mxu0 }
 0x2a1   :  { %702 = vrot.lane.b32.xlu1 %v1856_v37, %s1401_s2 }
 0x2a4   :  { %704 = vrot.lane.b32.xlu0 %v1862_v46, %s1401_s2 }
 0x2a5   :  { %706 = vrot.lane.b32.xlu1 %v1864_v5, %s1401_s2 }
 0x2a8   :  { %716 = vrot.lane.b32.xlu0 %v1854_v28, %s1402_s21 }
 0x2a9   :  { %718 = vrot.lane.b32.xlu1 %v1856_v37, %s1402_s21 }
 0x2ac   :  { %720 = vrot.lane.b32.xlu0 %v1862_v46, %s1402_s21 }
 0x2ad   :  { %722 = vrot.lane.b32.xlu1 %v1864_v5, %s1402_s21 }
 0x2b0   :  { %732 = vrot.lane.b32.xlu0 %v1854_v28, %s1403_s22 }
 0x2b1   :  { %734 = vrot.lane.b32.xlu1 %v1856_v37, %s1403_s22 }
 0x2b4   :  { %736 = vrot.lane.b32.xlu0 %v1862_v46, %s1403_s22 }
 0x2b5   :  { %738 = vrot.lane.b32.xlu1 %v1864_v5, %s1403_s22 }
 0x2b8   :  { %748 = vrot.lane.b32.xlu0 %v1854_v28, %s1404_s23 }
 0x2b9   :  { %750 = vrot.lane.b32.xlu1 %v1856_v37, %s1404_s23 }
 0x2bc   :  { %752 = vrot.lane.b32.xlu0 %v1862_v46, %s1404_s23 }
 0x2bd   :  { %754 = vrot.lane.b32.xlu1 %v1864_v5, %s1404_s23 }
 0x2c0   :  { %764 = vrot.lane.b32.xlu0 %v1854_v28, %s1405_s26 }
 0x2c1   :  { %766 = vrot.lane.b32.xlu1 %v1856_v37, %s1405_s26 }
 0x2c4   :  { %768 = vrot.lane.b32.xlu0 %v1862_v46, %s1405_s26 }
 0x2c5   :  { %770 = vrot.lane.b32.xlu1 %v1864_v5, %s1405_s26 }
 0x2c8   :  { %780 = vrot.lane.b32.xlu0 %v1854_v28, %s1406_s27 }
 0x2c9   :  { %782 = vrot.lane.b32.xlu1 %v1856_v37, %s1406_s27 }
 0x2cc   :  { %784 = vrot.lane.b32.xlu0 %v1862_v46, %s1406_s27 }
 0x2cd   :  { %786 = vrot.lane.b32.xlu1 %v1864_v5, %s1406_s27 }
 0x2d0   :  { %796 = vrot.lane.b32.xlu0 %v1854_v28, %s1407_s28 }
 0x2d1   :  { %798 = vrot.lane.b32.xlu1 %v1856_v37, %s1407_s28 }
 0x2d4   :  { %800 = vrot.lane.b32.xlu0 %v1862_v46, %s1407_s28 }
 0x2d5   :  { %802 = vrot.lane.b32.xlu1 %v1864_v5, %s1407_s28 }
 0x2d8   :  { %812 = vrot.lane.b32.xlu0 %v1854_v28, %s1408_s29 }
 0x2d9   :  { %814 = vrot.lane.b32.xlu1 %v1856_v37, %s1408_s29 }
 0x2dc   :  { %816 = vrot.lane.b32.xlu0 %v1862_v46, %s1408_s29 }
 0x2dd   :  { %818 = vrot.lane.b32.xlu1 %v1864_v5, %s1408_s29 }
 0x2e0   :  { %530 = vperm.xlu0 %1294, %v522_v19  }
 0x2e1   :  { %76 = vperm.xlu1 %1295, %v1551_v20  }
 0x2e4   :  { %831 = vperm.xlu0 %1294, %v1935_v36  }
 0x2e5   :  { %1001 = vperm.xlu1 %1295, %v1937_v48  }
 0x312   :  { %v701_v60 = vpop.permute.xlu0 %700 }
 0x313   :  { %v703_v4 = vpop.permute.xlu1 %702 }
 0x314   :  { %v710_v30 = vsel %vm265_vm2, %v701_v60, %v703_v4 }
 0x315   :  { %v713_v33 = vmul.f32 %v710_v30, %v1690_v41 }
 0x316   :  { %v705_v50 = vpop.permute.xlu0 %704 }
 0x317   :  { %v707_v51 = vpop.permute.xlu1 %706  ;;  %v709_v43 = vsel %vm265_vm2, %v703_v4, %v705_v50  ;;  %v2097_v4 = vld [vmem:[#allocation14_spill] sm:$0xff] }
 0x318   :  { %v708_v19 = vsel %vm265_vm2, %v705_v50, %v707_v51  ;;  %v711_v22 = vsel %vm265_vm2, %v707_v51, %v701_v60  ;;  %v714_v51 = vmul.f32 %v709_v43, %v1693_v31 }
 0x319   :  { %v712_v0 = vmul.f32 %v711_v22, %v1622_v56  ;;  %v715_v6 = vmul.f32 %v708_v19, %v1592_v34  ;;  %v2098_v22 = vld [vmem:[#allocation16_spill] sm:$0xff] }
 0x31a   :  { %v717_v26 = vpop.permute.xlu0 %716 }
 0x31b   :  { %v719_v49 = vpop.permute.xlu1 %718 }
 0x31c   :  { %v726_v20 = vsel %vm298_vm3, %v717_v26, %v719_v49 }
 0x31d   :  { %v729_v7 = vmul.f32 %v726_v20, %v1625_v57 }
 0x31e   :  { %v721_v38 = vpop.permute.xlu0 %720 }
 0x31f   :  { %v725_v11 = vsel %vm298_vm3, %v719_v49, %v721_v38  ;;  %v723_v39 = vpop.permute.xlu1 %722  ;;  %v1238_v15 = vpack.c.bf16 %v729_v7, %v713_v33 }
 0x320   :  { %v730_v35 = vmul.f32 %v725_v11, %v1628_v58  ;;  %v724_v57 = vsel %vm298_vm3, %v721_v38, %v723_v39  ;;  %v727_v41 = vsel %vm298_vm3, %v723_v39, %v717_v26 }
 0x321   :  { %v728_v60 = vmul.f32 %v727_v41, %v1631_v59  ;;  %v731_v50 = vmul.f32 %v724_v57, %v2097_v4  ;;  %1239 = vmatprep.subr.bf16.mxu0 %v1238_v15  ;;  %v2099_v4 = vld [vmem:[#allocation15_spill] sm:$0xff] }
 0x322   :  { %v733_v30 = vpop.permute.xlu0 %732  ;;  %v1256_v33 = vpack.c.bf16 %v730_v35, %v714_v51 }
 0x323   :  { %v1240_v49 = vpack.c.bf16 %v728_v60, %v712_v0  ;;  %v735_v58 = vpop.permute.xlu1 %734  ;;  %v1254_v20 = vpack.c.bf16 %v731_v50, %v715_v6 }
 0x324   :  { %v742_v34 = vsel %vm331_vm4, %v733_v30, %v735_v58 }
 0x325   :  { %1241 = vmatpush1.bf16.msra.mxu0 %v1240_v49  ;;  %1255 = vmatprep.subr.bf16.mxu1 %v1254_v20  ;;  %v745_v31 = vmul.f32 %v742_v34, %v1638_v62 }
 0x326   :  { %1257 = vmatpush1.bf16.msra.mxu1 %v1256_v33  ;;  %v737_v26 = vpop.permute.xlu0 %736 }
 0x327   :  { %v739_v7 = vpop.permute.xlu1 %738  ;;  %v741_v15 = vsel %vm331_vm4, %v735_v58, %v737_v26 }
 0x328   :  { %v740_v43 = vsel %vm331_vm4, %v737_v26, %v739_v7  ;;  %v743_v11 = vsel %vm331_vm4, %v739_v7, %v733_v30  ;;  %v2100_v30 = vld [vmem:[#allocation17_spill] sm:$0xff]  ;;  %v746_v58 = vmul.f32 %v741_v15, %v1641_v63 }
 0x329   :  { %v744_v60 = vmul.f32 %v743_v11, %v1644_v3  ;;  %v747_v50 = vmul.f32 %v740_v43, %v2099_v4 }
 0x32a   :  { %v749_v56 = vpop.permute.xlu0 %748 }
 0x32b   :  { %v751_v59 = vpop.permute.xlu1 %750 }
 0x32c   :  { %v758_v19 = vsel %vm364_vm5, %v749_v56, %v751_v59 }
 0x32d   :  { %v761_v38 = vmul.f32 %v758_v19, %v2098_v22 }
 0x32e   :  { %v753_v39 = vpop.permute.xlu0 %752 }
 0x32f   :  { %v757_v35 = vsel %vm364_vm5, %v751_v59, %v753_v39  ;;  %v755_v57 = vpop.permute.xlu1 %754  ;;  %v1242_v41 = vpack.c.bf16 %v761_v38, %v745_v31 }
 0x330   :  { %v762_v0 = vmul.f32 %v757_v35, %v1657_v9  ;;  %v756_v62 = vsel %vm364_vm5, %v753_v39, %v755_v57  ;;  %v759_v6 = vsel %vm364_vm5, %v755_v57, %v749_v56 }
 0x331   :  { %v760_v51 = vmul.f32 %v759_v6, %v1660_v10  ;;  %v763_v49 = vmul.f32 %v756_v62, %v2100_v30  ;;  %1243 = vmatprep.subr.bf16.mxu0 %v1242_v41 }
 0x332   :  { %v765_v20 = vpop.permute.xlu0 %764  ;;  %v1260_v7 = vpack.c.bf16 %v762_v0, %v746_v58 }
 0x333   :  { %v1244_v33 = vpack.c.bf16 %v760_v51, %v744_v60  ;;  %v767_v9 = vpop.permute.xlu1 %766  ;;  %v1258_v26 = vpack.c.bf16 %v763_v49, %v747_v50 }
 0x334   :  { %v774_v34 = vsel %vm397_vm6, %v765_v20, %v767_v9 }
 0x335   :  { %1245 = vmatpush1.bf16.msra.mxu0 %v1244_v33  ;;  %1259 = vmatprep.subr.bf16.mxu1 %v1258_v26  ;;  %v776_v56 = vmul.f32 %v774_v34, %v1668_v13 }
 0x336   :  { %1261 = vmatpush1.bf16.msra.mxu1 %v1260_v7  ;;  %v769_v3 = vpop.permute.xlu0 %768 }
 0x337   :  { %v773_v10 = vsel %vm397_vm6, %v767_v9, %v769_v3  ;;  %v771_v59 = vpop.permute.xlu1 %770  ;;  %v1248_v13 = vpack.c.bf16 %v776_v56, %v1854_v28 }
 0x338   :  { %v777_v63 = vmul.f32 %v773_v10, %v1671_v16  ;;  %v772_v19 = vsel %vm397_vm6, %v769_v3, %v771_v59  ;;  %v775_v31 = vsel %vm397_vm6, %v771_v59, %v765_v20 }
 0x339   :  { %v778_v22 = vmul.f32 %v772_v19, %v1680_v32  ;;  %v779_v38 = vmul.f32 %v775_v31, %v1687_v40 }
 0x33a   :  { %v781_v43 = vpop.permute.xlu0 %780  ;;  %v1246_v11 = vpack.c.bf16 %v777_v63, %v1856_v37 }
 0x33b   :  { %v1264_v39 = vpack.c.bf16 %v778_v22, %v1862_v46  ;;  %v783_v15 = vpop.permute.xlu1 %782  ;;  %v1262_v16 = vpack.c.bf16 %v779_v38, %v1864_v5 }
 0x33c   :  { %1247 = vmatprep.subr.bf16.mxu0 %v1246_v11  ;;  %v790_v40 = vsel %vm430_vm7, %v781_v43, %v783_v15 }
 0x33d   :  { %1249 = vmatpush1.bf16.msra.mxu0 %v1248_v13  ;;  %1263 = vmatprep.subr.bf16.mxu1 %v1262_v16  ;;  %v792_v62 = vmul.f32 %v790_v40, %v1787_v45 }
 0x33e   :  { %1265 = vmatpush1.bf16.msra.mxu1 %v1264_v39  ;;  %v785_v35 = vpop.permute.xlu0 %784 }
 0x33f   :  { %v787_v57 = vpop.permute.xlu1 %786  ;;  %v789_v28 = vsel %vm430_vm7, %v783_v15, %v785_v35 }
 0x340   :  { %v788_v46 = vsel %vm430_vm7, %v785_v35, %v787_v57  ;;  %v791_v5 = vsel %vm430_vm7, %v787_v57, %v781_v43  ;;  %v793_v50 = vmul.f32 %v789_v28, %v1702_v44 }
 0x341   :  { %v794_v58 = vmul.f32 %v788_v46, %v1706_v52  ;;  %v795_v45 = vmul.f32 %v791_v5, %v1760_v29 }
 0x342   :  { %v797_v41 = vpop.permute.xlu0 %796 }
 0x343   :  { %v799_v32 = vpop.permute.xlu1 %798 }
 0x344   :  { %v806_v37 = vsel %vm463_vm8, %v797_v41, %v799_v32 }
 0x345   :  { %v808_v6 = vmul.f32 %v806_v37, %v1765_v17 }
 0x346   :  { %v801_v0 = vpop.permute.xlu0 %800 }
 0x347   :  { %v805_v60 = vsel %vm463_vm8, %v799_v32, %v801_v0  ;;  %v803_v4 = vpop.permute.xlu1 %802  ;;  %v1252_v26 = vpack.c.bf16 %v808_v6, %v792_v62 }
 0x348   :  { %v809_v51 = vmul.f32 %v805_v60, %v1768_v42  ;;  %v804_v30 = vsel %vm463_vm8, %v801_v0, %v803_v4  ;;  %v807_v49 = vsel %vm463_vm8, %v803_v4, %v797_v41 }
 0x349   :  { %v810_v17 = vmul.f32 %v804_v30, %v1779_v23  ;;  %v811_v20 = vmul.f32 %v807_v49, %v1782_v24 }
 0x34a   :  { %v813_v33 = vpop.permute.xlu0 %812  ;;  %v1250_v9 = vpack.c.bf16 %v809_v51, %v793_v50 }
 0x34b   :  { %v1268_v44 = vpack.c.bf16 %v810_v17, %v794_v58  ;;  %v815_v7 = vpop.permute.xlu1 %814  ;;  %v1266_v42 = vpack.c.bf16 %v811_v20, %v795_v45 }
 0x34c   :  { %1251 = vmatprep.subr.bf16.mxu0 %v1250_v9  ;;  %v822_v34 = vsel %vm496_vm9, %v813_v33, %v815_v7 }
 0x34d   :  { %1253 = vmatpush1.bf16.msra.mxu0 %v1252_v26  ;;  %1267 = vmatprep.subr.bf16.mxu1 %v1266_v42  ;;  %v824_v10 = vmul.f32 %v822_v34, %v1822_v25 }
 0x34e   :  { %1269 = vmatpush1.bf16.msra.mxu1 %v1268_v44  ;;  %v817_v52 = vpop.permute.xlu0 %816 }
 0x34f   :  { %v821_v29 = vsel %vm496_vm9, %v815_v7, %v817_v52  ;;  %v819_v23 = vpop.permute.xlu1 %818 }
 0x350   :  { %v825_v24 = vmul.f32 %v821_v29, %v1813_v8  ;;  %v820_v3 = vsel %vm496_vm9, %v817_v52, %v819_v23  ;;  %v823_v56 = vsel %vm496_vm9, %v819_v23, %v813_v33  ;;  %v1298_v29 = vld [vmem:[#allocation2] sm:$0xff] }
 0x351   :  { %v826_v59 = vmul.f32 %v820_v3, %v1816_v12  ;;  %v827_v63 = vmul.f32 %v823_v56, %v1819_v47  ;;  %v2101_v3 = vld [vmem:[#allocation12_spill] sm:$0xff] }
 0x352   :  { %852 = vmatprep.subr.mxu0 %v825_v24 }
 0x353   :  { %853 = vmatpush1.msra.mxu0 %v824_v10  ;;  %923 = vmatprep.subr.mxu1 %v827_v63  ;;  %v1299_v10 = vld [vmem:[#allocation2 + $0x8] sm:$0xff]  ;;  %v2102_v63 = vld [vmem:[#allocation13_spill] sm:$0xff] }
 0x354   :  { %1202 = vmatmul.mubr.msk.f32.vlgmr.msra.gmra.mrb[8].mxu0 %vm533_vm10, %v1935_v36  ;;  %924 = vmatpush1.msra.mxu1 %v826_v59 }
 0x355   :  { %1203 = vmatmul.mubr.msk.f32.vlgmr.msra.gmra.mrb[8].mxu1 %vm533_vm10, %v1935_v36  ;;  %1071 = vmatprep.mubr.f32.mxu0 %v2096_v18 }
 0x356   :  { %1142 = vmatprep.mubr.f32.mxu1 %v2096_v18 }
 0x35f   :  { %v531_v27 = vpop.permute.xlu0 %530 }
 0x360   :  { %v611_v8 = vadd.f32 %v1918_v53, %v531_v27  ;;  %v613_v12 = vadd.f32 %v1922_v55, %v531_v27  ;;  %v688_v47 = vadd.f32 %v1920_v2, %v531_v27  ;;  %v690_v25 = vadd.f32 %v1924_v1, %v531_v27  ;;  %v77_v19 = vpop.permute.xlu1 %76 }
 0x361   :  { %v166_v31 = vadd.f32 %v1846_v54, %v77_v19  ;;  %v168_v22 = vadd.f32 %v1850_v14, %v77_v19  ;;  %v243_v36 = vadd.f32 %v1848_v61, %v77_v19  ;;  %v245_v38 = vadd.f32 %v1852_v21, %v77_v19 }
 0x362   :  { %v696_v43 = vmax.f32 %v611_v8, 0.0  ;;  %v697_v18 = vmax.f32 %v613_v12, 0.0  ;;  %v698_v11 = vmax.f32 %v688_v47, 0.0  ;;  %v699_v13 = vmax.f32 %v690_v25, 0.0 }
 0x363   :  { %v251_v53 = vmax.f32 %v166_v31, 0.0  ;;  %v252_v39 = vmax.f32 %v168_v22, 0.0  ;;  %v253_v55 = vmax.f32 %v243_v36, 0.0  ;;  %v254_v15 = vmax.f32 %v245_v38, 0.0  ;;  %v832_v57 = vpop.permute.xlu0 %831 }
 0x364   :  { %v986_v2 = vrot.slane %v696_v43, 4  ;;  %v987_v16 = vrot.slane %v697_v18, 4  ;;  %v988_v1 = vrot.slane %v698_v11, 4  ;;  %v989_v35 = vrot.slane %v699_v13, 4  ;;  %v1002_v58 = vpop.permute.xlu1 %1001 }
 0x366   :  { %v994_v54 = vsel %vm84_vm0, %v251_v53, %v986_v2  ;;  %v995_v14 = vsel %vm84_vm0, %v252_v39, %v987_v16  ;;  %v996_v61 = vsel %vm84_vm0, %v253_v55, %v988_v1  ;;  %v997_v21 = vsel %vm84_vm0, %v254_v15, %v989_v35 }
 0x427   :  { %v902_v41 = vpop.f32.mrb[8].mxu0 }
 0x428   :  { %v903_v32 = vadd.f32 %v902_v41, %v832_v57  ;;  %v904_v40 = vpop.f32.mrb[9].mxu0  ;;  %v973_v37 = vpop.f32.mrb[8].mxu1 }
 0x429   :  { %v905_v28 = vadd.f32 %v904_v40, %v832_v57  ;;  %v974_v46 = vadd.f32 %v973_v37, %v832_v57  ;;  %v975_v5 = vpop.f32.mrb[9].mxu1 }
 0x42a   :  { %v978_v0 = vmax.f32 %v903_v32, 0.0  ;;  %v976_v62 = vadd.f32 %v975_v5, %v832_v57 }
 0x42b   :  { %v979_v6 = vmax.f32 %v905_v28, 0.0  ;;  %v980_v60 = vmax.f32 %v974_v46, 0.0 }
 0x42c   :  { %v1272_v4 = vpack.c.bf16 %v978_v0, %v994_v54  ;;  %v981_v50 = vmax.f32 %v976_v62, 0.0 }
 0x42d   :  { %v1270_v51 = vpack.c.bf16 %v979_v6, %v995_v14  ;;  %v1276_v30 = vpack.c.bf16 %v980_v60, %v996_v61 }
 0x42e   :  { %v1274_v49 = vpack.c.bf16 %v981_v50, %v997_v21 }
 0x42f   :  { %1271 = vmatprep.subr.bf16.mxu0 %v1270_v51 }
 0x430   :  { %1273 = vmatpush1.bf16.msra.mxu0 %v1272_v4  ;;  %1275 = vmatprep.subr.bf16.mxu1 %v1274_v49 }
 0x431   :  { %1277 = vmatpush1.bf16.msra.mxu1 %v1276_v30 }
 0x433   :  { %1204 = vmatmul.mubr.msk.f32.vlgmr.msra.gmra.mrb[10].mxu0 %vm1004_vm11, %v1937_v48 }
 0x434   :  { %1205 = vmatmul.mubr.msk.f32.vlgmr.msra.gmra.mrb[10].mxu1 %vm1004_vm11, %v1937_v48 }
 0x506   :  { %v1073_v45 = vpop.f32.mrb[10].mxu0 }
 0x507   :  { %v1074_v17 = vadd.f32 %v1073_v45, %v1002_v58  ;;  %v1075_v20 = vpop.f32.mrb[11].mxu0  ;;  %v1144_v33 = vpop.f32.mrb[10].mxu1 }
 0x508   :  { %v1076_v9 = vadd.f32 %v1075_v20, %v1002_v58  ;;  %v1145_v26 = vadd.f32 %v1144_v33, %v1002_v58  ;;  %v1146_v44 = vpop.f32.mrb[11].mxu1 }
 0x509   :  { %v1149_v7 = vmul.f32 0.17, %v1074_v17  ;;  %v1147_v42 = vadd.f32 %v1146_v44, %v1002_v58 }
 0x50a   :  { %v1150_v34 = vmul.f32 0.17, %v1076_v9  ;;  %v1151_v52 = vmul.f32 0.17, %v1145_v26 }
 0x50b   :  { %v1153_v23 = vadd.f32 %v1298_v29, %v1149_v7  ;;  %v1152_v24 = vmul.f32 0.17, %v1147_v42 }
 0x50c   :  { %v1154_v56 = vadd.f32 %v1150_v34, %v2101_v3  ;;  %v1155_v59 = vadd.f32 %v1299_v10, %v1151_v52 }
 0x50d   :  { %v1157_v48 = vmax.f32 %v1153_v23, 0.0  ;;  %v1156_v27 = vadd.f32 %v1152_v24, %v2102_v63 }
 0x50e   :  { %v1158_v8 = vmax.f32 %v1154_v56, 0.0  ;;  %v1159_v12 = vmax.f32 %v1155_v59, 0.0 }
 0x50f   :  { %v1160_v47 = vmax.f32 %v1156_v27, 0.0 }
 0x510   :  { %v1163_v25 = vcombine.low %v1157_v48, %v1158_v8 }
 0x511   :  { %v1168_v19 = vcombine.low %v1159_v12, %v1160_v47 }
 0x512   :  { %1165 = vst [vmem:[#allocation8] sm:$0xff] %v1163_v25 }
 0x513   :  { %1171 = vst [vmem:[#allocation8 + $0x8] sm:$0xff] %v1168_v19 }
 0x514   :  { %1377 = shalt.err (!%p1374_p0)
}
 0x515   :  { %s1378_s8 = scalar_lea.hbm %s2081_s3, 256 }
 0x516   :  { %p1379_p1 = scmp.ne.s32.totalorder %s2081_s3, %s1378_s8  ;;  %p1382_p2 = scmp.lt.u32.totalorder %s1378_s8, %s2081_s3 }
 0x518   :  { %p1384_p3 = pnand %p1382_p2, %p1379_p1 }
 0x51a   :  { %1387 = shalt.err (!%p1384_p3)
}
 0x51b   :  { %1183 = dma.vmem_to_hbm [thread:$0]  %s1178_s4, 256, %s2081_s3, [#allocation4], %s1396_s24, %s1396_s24, %s1397_s25  }
 0x51c   :  { %1392 = dma.done.wait [#allocation4], 256  }
 0x51d   :  { %1393 = vsyncadd [#allocation4], 4294967040 }
 0x51e   :  { %1187 = vsyncpa [#allocation3], 1 }
 0x51f   :  { %1188 = vsyncpa [#allocation6], 1 }
 0x520   :  { %1189 = vsyncpa [#allocation4], 1 }

</bundles_post_ra>
